<compile_context>
chip_gen: v7x
topology: tpu7x:2x2x1
jax: 0.10.0
libtpu: 0.0.40
codegen_flags: <defaults>
</compile_context>

<pallas_src>
import jax
import jax.numpy as jnp
from jax import lax
from jax.experimental import pallas as pl
from jax.experimental.pallas import tpu as pltpu


def _round_up(x: int, m: int) -> int:
    return (x + m - 1) // m * m


# ---------------------------------------------------------------------------
# parameter setup (glue)
# ---------------------------------------------------------------------------
def _spectral_normalize(w):
    # nn.utils.spectral_norm divides by the top singular value of
    # w.reshape(out, -1) estimated by power iteration; parameters here are
    # synthetic, so we use the exact top singular value (SVD) instead.
    # TODO(synk): PyTorch's running power-iteration (u/v buffers) has no
    # meaningful Pallas equivalent; exact sigma is used at setup time.
    mat = w.reshape(w.shape[0], -1)
    sigma = jnp.linalg.svd(mat, compute_uv=False)[0]
    return w / sigma


def init_params(key, ichannels, ochannels, cardinality, stride):
    hchannels = ochannels // 2
    K = 2 + stride
    k1, k2, k3 = jax.random.split(key, 3)
    w_reduce = jax.random.normal(k1, (hchannels, ichannels, 1, 1), jnp.float32) * 0.2
    w_conv = jax.random.normal(
        k2, (hchannels, hchannels // cardinality, K, K), jnp.float32) * 0.2
    w_expand = jax.random.normal(k3, (ochannels, hchannels, 1, 1), jnp.float32) * 0.2
    return {
        "reduce": _spectral_normalize(w_reduce),
        "conv": _spectral_normalize(w_conv),
        "expand": _spectral_normalize(w_expand),
    }


# ---------------------------------------------------------------------------
# weight preparation (pure layout / tiny matmuls, done once per call)
# ---------------------------------------------------------------------------
def _folded_tap_weights(params, cardinality):
    """Fold the 1x1 reduce into every KxK tap (exact). Returns (KK*Ci, hc)."""
    w_conv = params["conv"]                           # (hc, hc//card, K, K)
    hc, ipg, K, _ = w_conv.shape
    opg = hc // cardinality
    wr = params["reduce"][:, :, 0, 0].T               # (Ci, hc)
    Ci = wr.shape[0]
    taps = []
    for ky in range(K):
        for kx in range(K):
            cols = []
            for g in range(cardinality):
                wg = w_conv[g * opg:(g + 1) * opg, :, ky, kx]        # (opg, ipg)
                cols.append(wr[:, g * ipg:(g + 1) * ipg] @ wg.T)     # (Ci, opg)
            taps.append(jnp.concatenate(cols, axis=1))               # (Ci, hc)
    return jnp.stack(taps).reshape(K * K * Ci, hc)


def _grouped_tap_weights(w_conv, cardinality):
    """Dense (block-diagonal) per-tap grouped-conv weight. Returns (KK*hc, hc)."""
    hc, ipg, K, _ = w_conv.shape
    opg = hc // cardinality
    taps = []
    for ky in range(K):
        for kx in range(K):
            wt = jnp.zeros((hc, hc), w_conv.dtype)
            for g in range(cardinality):
                blk = w_conv[g * opg:(g + 1) * opg, :, ky, kx].T     # (ipg, opg)
                wt = wt.at[g * ipg:(g + 1) * ipg, g * opg:(g + 1) * opg].set(blk)
            taps.append(wt)
    return jnp.stack(taps).reshape(K * K * hc, hc)


def _im2col(act, K, stride, dilate, Ho, Wo):
    """(N,H,W,C) -> (N*Ho*Wo, KK*C).  padding=dilate, dilation=1 (as PyTorch)."""
    N = act.shape[0]
    C = act.shape[-1]
    xs = jnp.pad(act, ((0, 0), (dilate, dilate), (dilate, dilate), (0, 0)))
    taps = [xs[:, ky::stride, kx::stride, :][:, :Ho, :Wo, :]
            for ky in range(K) for kx in range(K)]
    return jnp.concatenate(taps, axis=-1).reshape(N * Ho * Wo, K * K * C)


# ---------------------------------------------------------------------------
# VMEM sizing helpers
# ---------------------------------------------------------------------------
def _vmem_budget_and_limit():
    cap = 64 * 1024 * 1024
    try:
        info = pltpu.get_tpu_info()
        cap = int(getattr(info, "vmem_capacity_bytes", cap)) or cap
    except Exception:
        pass
    budget = (cap * 5) // 8      # 80 MiB on 128 MiB chips, 40 MiB on v7x
    limit = (cap * 3) // 4       # 96 MiB on 128 MiB chips, 48 MiB on v7x
    return budget, limit


def _choose_tm(m_rows, bytes_fn, budget):
    tm = min(512, max(8, _round_up(pl.cdiv(m_rows, 2), 8)))
    while tm > 8 and bytes_fn(tm) > budget:
        tm = max(8, _round_up(tm // 2, 8))
    num_m = pl.cdiv(m_rows, tm)
    if num_m % 2:
        num_m += 1               # even split across v7x's two TensorCores
    return tm, num_m


# ---------------------------------------------------------------------------
# Pallas kernels
# ---------------------------------------------------------------------------
def _reduce_kernel(x_ref, w_ref, o_ref):
    # 1x1 reduce conv as a row-blocked GEMM (weight VMEM-resident).
    o_ref[...] = jnp.dot(x_ref[...], w_ref[...],
                         preferred_element_type=jnp.float32).astype(o_ref.dtype)


def _make_main_kernel(has_shortcut):
    def kernel(*refs):
        if has_shortcut:
            patches_ref, wc_ref, we_ref, pool_ref, out_ref = refs
        else:
            patches_ref, wc_ref, we_ref, out_ref = refs
        # Grouped KxK conv (+ folded reduce when Ci <= hc): a single GEMM over
        # the collapsed KK*C contraction; f32 accumulation on the MXU.
        hidden = jnp.dot(patches_ref[...], wc_ref[...],
                         preferred_element_type=jnp.float32)
        out = jnp.dot(hidden.astype(we_ref.dtype), we_ref[...],
                      preferred_element_type=jnp.float32)
        if has_shortcut:
            # residual add stays in f32 before the single cast/store
            out = out + pool_ref[...].astype(jnp.float32)
        out_ref[...] = out.astype(out_ref.dtype)          # one lane-dense store
    return kernel


def _reduce_1x1_pallas(x_nhwc, w_reduce, compute_dtype, budget, limit):
    """Pallas GEMM: (N*H*W, Ci) @ reduce^T -> (N,H,W,hc)."""
    N, H, W, Ci = x_nhwc.shape
    hc = w_reduce.shape[0]
    Cp = _round_up(Ci, 128)
    Hcp = _round_up(hc, 128)
    Mx = N * H * W
    itemsize = jnp.dtype(compute_dtype).itemsize

    def vbytes(tm):
        return (2 * tm * Cp + 2 * Cp * Hcp + 2 * tm * Hcp) * itemsize

    tm, num_m = _choose_tm(Mx, vbytes, budget)
    M_pad = num_m * tm

    xf = x_nhwc.reshape(Mx, Ci).astype(compute_dtype)
    xf = jnp.pad(xf, ((0, M_pad - Mx), (0, Cp - Ci)))
    wr = jnp.pad(w_reduce[:, :, 0, 0].T,
                 ((0, Cp - Ci), (0, Hcp - hc))).astype(compute_dtype)

    out = pl.pallas_call(
        _reduce_kernel,
        out_shape=jax.ShapeDtypeStruct((M_pad, Hcp), compute_dtype),
        grid_spec=pltpu.PrefetchScalarGridSpec(
            num_scalar_prefetch=0,
            grid=(num_m,),
            in_specs=[pl.BlockSpec((tm, Cp), lambda i: (i, 0)),
                      pl.BlockSpec((Cp, Hcp), lambda i: (0, 0))],   # resident
            out_specs=pl.BlockSpec((tm, Hcp), lambda i: (i, 0)),
        ),
        compiler_params=pltpu.CompilerParams(
            dimension_semantics=("parallel",),
            vmem_limit_bytes=limit,
        ),
    )(xf, wr)
    return out[:Mx, :hc].reshape(N, H, W, hc)


# ---------------------------------------------------------------------------
# wrapper (layout-only glue + pallas_call)
# ---------------------------------------------------------------------------
def resnext_bottleneck_forward(x_nchw, params, cardinality, stride=1, dilate=1,
                               compute_dtype=jnp.bfloat16, out_dtype=None):
    if out_dtype is None:
        out_dtype = compute_dtype
    N, Ci, H, W = x_nchw.shape
    hc = params["reduce"].shape[0]
    oc = params["expand"].shape[0]
    K = 2 + stride
    KK = K * K

    # padding=dilate, dilation=1 -> exactly the PyTorch module's conv geometry
    Ho = (H + 2 * dilate - K) // stride + 1
    Wo = (W + 2 * dilate - K) // stride + 1
    M = N * Ho * Wo
    has_shortcut = stride > 1

    Hcp = _round_up(hc, 128)
    Ocp = _round_up(oc, 128)

    budget, limit = _vmem_budget_and_limit()
    x_nhwc = jnp.transpose(x_nchw, (0, 2, 3, 1))

    if Ci <= hc:
        # Fold the 1x1 reduce into every tap: one kernel, patches in Ci space.
        act = x_nhwc.astype(compute_dtype)                              # (N,H,W,Ci)
        wc_raw = _folded_tap_weights(params, cardinality)               # (KK*Ci, hc)
        c_in = Ci
    else:
        # hc < Ci (typical ResNeXt): reduce once per pixel (Pallas GEMM), then
        # im2col in the smaller hc space -> ~Ci/hc less patch HBM traffic.
        act = _reduce_1x1_pallas(x_nhwc, params["reduce"], compute_dtype,
                                 budget, limit)                         # (N,H,W,hc)
        wc_raw = _grouped_tap_weights(params["conv"], cardinality)      # (KK*hc, hc)
        c_in = hc

    Kin = KK * c_in
    Kp = _round_up(Kin, 128)                    # KK*C padded ONCE, not per tap

    wc = jnp.pad(wc_raw, ((0, Kp - Kin), (0, Hcp - hc))).astype(compute_dtype)
    we = params["expand"][:, :, 0, 0].T                                 # (hc, oc)
    we = jnp.pad(we, ((0, Hcp - hc), (0, Ocp - oc))).astype(compute_dtype)

    itemsize = jnp.dtype(compute_dtype).itemsize
    out_itemsize = jnp.dtype(out_dtype).itemsize

    def vbytes(tm):
        b = 2 * tm * Kp * itemsize            # patch tile (double-buffered)
        b += 2 * Kp * Hcp * itemsize          # resident conv weight
        b += 2 * Hcp * Ocp * itemsize         # resident expand weight
        b += 2 * tm * Ocp * out_itemsize      # output tile
        if has_shortcut:
            b += 2 * tm * Ocp * itemsize      # pre-summed pool tile
        return b

    TM, num_m = _choose_tm(M, vbytes, budget)
    M_pad = num_m * TM

    # im2col (pure layout, zero FLOPs)
    patches = _im2col(act, K, stride, dilate, Ho, Wo)                   # (M, Kin)
    patches = jnp.pad(patches, ((0, M_pad - M), (0, Kp - Kin)))

    inputs = [patches, wc, we]
    in_specs = [
        pl.BlockSpec((TM, Kp), lambda i: (i, 0)),
        pl.BlockSpec((Kp, Hcp), lambda i: (0, 0)),      # VMEM-resident weight
        pl.BlockSpec((Hcp, Ocp), lambda i: (0, 0)),     # VMEM-resident weight
    ]

    if has_shortcut:
        assert Ci == oc, "residual add requires ichannels == ochannels"
        Hp = (H - 2) // stride + 1
        Wp = (W - 2) // stride + 1
        assert (Hp, Wp) == (Ho, Wo), "shortcut / conv spatial mismatch"
        # AvgPool2d(2, stride) pre-averaged in the wrapper: one slab, one DMA
        # per row block instead of four tap reads.
        x32 = x_nhwc.astype(jnp.float32)
        pooled = (x32[:, 0::stride, 0::stride, :][:, :Hp, :Wp, :]
                  + x32[:, 0::stride, 1::stride, :][:, :Hp, :Wp, :]
                  + x32[:, 1::stride, 0::stride, :][:, :Hp, :Wp, :]
                  + x32[:, 1::stride, 1::stride, :][:, :Hp, :Wp, :]) * 0.25
        pooled = pooled.reshape(M, Ci).astype(compute_dtype)
        pool = jnp.pad(pooled, ((0, M_pad - M), (0, Ocp - Ci)))
        inputs.append(pool)
        in_specs.append(pl.BlockSpec((TM, Ocp), lambda i: (i, 0)))

    out_flat = pl.pallas_call(
        _make_main_kernel(has_shortcut),
        out_shape=jax.ShapeDtypeStruct((M_pad, Ocp), out_dtype),
        grid_spec=pltpu.PrefetchScalarGridSpec(
            num_scalar_prefetch=0,
            grid=(num_m,),
            in_specs=in_specs,
            out_specs=pl.BlockSpec((TM, Ocp), lambda i: (i, 0)),
        ),
        compiler_params=pltpu.CompilerParams(
            dimension_semantics=("parallel",),
            vmem_limit_bytes=limit,
        ),
    )(*inputs)

    out = out_flat[:M, :oc].reshape(N, Ho, Wo, oc)
    return jnp.transpose(out, (0, 3, 1, 2))


# ---------------------------------------------------------------------------
# pure-JAX reference (for correctness check only)
# ---------------------------------------------------------------------------
def reference_forward(x, params, cardinality, stride, dilate):
    dn = ("NCHW", "OIHW", "NCHW")
    hp = lax.Precision.HIGHEST
    b = lax.conv_general_dilated(x, params["reduce"], (1, 1), "VALID",
                                 dimension_numbers=dn, precision=hp)
    b = lax.conv_general_dilated(b, params["conv"], (stride, stride),
                                 [(dilate, dilate), (dilate, dilate)],
                                 dimension_numbers=dn,
                                 feature_group_count=cardinality, precision=hp)
    b = lax.conv_general_dilated(b, params["expand"], (1, 1), "VALID",
                                 dimension_numbers=dn, precision=hp)
    if stride > 1:
        s = lax.reduce_window(x, 0.0, lax.add, (1, 1, 2, 2),
                              (1, 1, stride, stride), "VALID") / 4.0
        b = b + s
    return b


if __name__ == "__main__":
    key = jax.random.PRNGKey(0)
    kx1, kx3, kp1, kp2, kp3 = jax.random.split(key, 5)

    def rel_err(y, r):
        y = y.astype(jnp.float32)
        return float(jnp.max(jnp.abs(y - r)) / (jnp.max(jnp.abs(r)) + 1e-12))

    x = jax.random.normal(kx1, (2, 8, 16, 16), jnp.float32)   # NCHW

    # config 1: stride=1 (no shortcut), pre-reduce path (hc=4 < Ci=8), K=3
    p1 = init_params(kp1, ichannels=8, ochannels=8, cardinality=2, stride=1)
    r1 = reference_forward(x, p1, cardinality=2, stride=1, dilate=1)
    y1 = jax.block_until_ready(resnext_bottleneck_forward(
        x, p1, 2, stride=1, dilate=1, compute_dtype=jnp.float32))
    y1b = jax.block_until_ready(resnext_bottleneck_forward(
        x, p1, 2, stride=1, dilate=1, compute_dtype=jnp.bfloat16))
    assert y1.shape == (2, 8, 16, 16)
    assert rel_err(y1, r1) < 2e-2, rel_err(y1, r1)
    assert rel_err(y1b, r1) < 8e-2, rel_err(y1b, r1)

    # config 2: stride=2 (AvgPool2d shortcut), pre-reduce path, K=4
    p2 = init_params(kp2, ichannels=8, ochannels=8, cardinality=2, stride=2)
    r2 = reference_forward(x, p2, cardinality=2, stride=2, dilate=1)
    y2 = jax.block_until_ready(resnext_bottleneck_forward(
        x, p2, 2, stride=2, dilate=1, compute_dtype=jnp.float32))
    y2b = jax.block_until_ready(resnext_bottleneck_forward(
        x, p2, 2, stride=2, dilate=1, compute_dtype=jnp.bfloat16))
    assert y2.shape == (2, 8, 8, 8)
    assert rel_err(y2, r2) < 2e-2, rel_err(y2, r2)
    assert rel_err(y2b, r2) < 8e-2, rel_err(y2b, r2)

    # config 3: stride=1, fold path (Ci=4 <= hc=8), cardinality=4
    x3 = jax.random.normal(kx3, (2, 4, 16, 16), jnp.float32)
    p3 = init_params(kp3, ichannels=4, ochannels=16, cardinality=4, stride=1)
    r3 = reference_forward(x3, p3, cardinality=4, stride=1, dilate=1)
    y3 = jax.block_until_ready(resnext_bottleneck_forward(
        x3, p3, 4, stride=1, dilate=1, compute_dtype=jnp.float32))
    assert y3.shape == (2, 16, 16, 16)
    assert rel_err(y3, r3) < 2e-2, rel_err(y3, r3)

    print("KERNEL_OK")
</pallas_src>

<mosaic_0001>
module attributes {stable_mosaic.version = 11 : i64} {
  func.func @_reduce_kernel(%arg0: i32, %arg1: memref<256x128xf32, #tpu.memory_space<vmem>>, %arg2: memref<128x128xf32, #tpu.memory_space<vmem>>, %arg3: memref<256x128xf32, #tpu.memory_space<vmem>>) attributes {dimension_semantics = [#tpu.dimension_semantics<parallel>], iteration_bounds = array<i64: 2>, scalar_prefetch = 0 : i64, scratch_operands = 0 : i64, tpu.core_type = #tpu.core_type<tc>, window_params = [{transform_indices = @transform_0, window_bounds = array<i64: 256, 128>}, {pipeline_mode = #tpu.pipeline_mode<synchronous>, transform_indices = @transform_1, window_bounds = array<i64: 128, 128>}, {transform_indices = @transform_2, window_bounds = array<i64: 256, 128>}]} {
    %c0 = arith.constant 0 : index
    %c0_0 = arith.constant 0 : index
    %0 = vector.load %arg1[%c0, %c0_0] : memref<256x128xf32, #tpu.memory_space<vmem>>, vector<256x128xf32>
    %c0_1 = arith.constant 0 : index
    %c0_2 = arith.constant 0 : index
    %1 = vector.load %arg2[%c0_1, %c0_2] : memref<128x128xf32, #tpu.memory_space<vmem>>, vector<128x128xf32>
    %cst = arith.constant dense<0.000000e+00> : vector<256x128xf32>
    %2 = tpu.matmul %0, %1, %cst {dimension_numbers = #tpu.dot_dimension_numbers<[1], [0], [0], [1], [0, 0, 1, 1], [], []>} : vector<256x128xf32>, vector<128x128xf32>, vector<256x128xf32> -> vector<256x128xf32>
    %c0_3 = arith.constant 0 : index
    %c0_4 = arith.constant 0 : index
    %3 = vector.load %arg3[%c0_3, %c0_4] : memref<256x128xf32, #tpu.memory_space<vmem>>, vector<256x128xf32>
    tpu.vector_store %arg3[%c0_3, %c0_4], %2 {strides = array<i32>} : memref<256x128xf32, #tpu.memory_space<vmem>>, vector<256x128xf32>,
    return
  }
  func.func @transform_0(%arg0: i32) -> (i32, i32) {
    %c0_i32 = arith.constant 0 : i32
    %c0_i32_0 = arith.constant 0 : i32
    return %arg0, %c0_i32 : i32, i32
  }
  func.func @transform_1(%arg0: i32) -> (i32, i32) {
    %c0_i32 = arith.constant 0 : i32
    %c0_i32_0 = arith.constant 0 : i32
    %c0_i32_1 = arith.constant 0 : i32
    return %c0_i32, %c0_i32_0 : i32, i32
  }
  func.func @transform_2(%arg0: i32) -> (i32, i32) {
    %c0_i32 = arith.constant 0 : i32
    %c0_i32_0 = arith.constant 0 : i32
    return %arg0, %c0_i32 : i32, i32
  }
}

</mosaic_0001>

<bundles_post_ra>
// kernel: tpu_custom_call.1
= control target key start
LH: loop header
LB: loop body
LE: loop exit
PB: predicated region body
PF: predicated region fallthrough
CT: control target
= control target key end

     0   :  { %7 = vsyncpa [#allocation3], 0  ;;  %s1268_s0 = inlined_call_operand.hbm [shape: f32[512,128], index: 0, kind: input, shape index: {}]   ;;  %s1269_s1 = inlined_call_operand.hbm [shape: f32[128,128], index: 1, kind: input, shape index: {}]   ;;  %s1270_s2 = inlined_call_operand.hbm [shape: f32[512,128], index: 2, kind: output, shape index: {}]  }
   0x1   :  { %9 = vsyncpa [#allocation3 + $0x1], 0 }
   0x2   :  { %10 = vsyncpa [#allocation6], 0 }
   0x3   :  { %11 = vsyncpa [#allocation4], 0 }
   0x4   :  { %13 = vsyncpa [#allocation4 + $0x1], 0  ;;  %s988_s9 = smov 0   ;;  %s990_s10 = smov 0  }
   0x5   :  { %s992_s11 = smov 0   ;;  %s994_s12 = smov 0  }
   0x6 LB: > { %s1009_s13 = sadd.s32 4294967295, %s964_s12   ;;  %s581_s14 = sadd.s32 4294967294, %s964_s12   ;;  %s964_s12 = sphi %s994_s12, %s1290_s12   ;;  %s960_s11 = sphi %s992_s11, %s1289_s11   ;;  %s956_s10 = sphi %s990_s10, %s1288_s10   ;;  %s952_s9 = sphi %s988_s9, %s1287_s9  }
   0x7   : > { %p39_p0 = scmp.ne.s32.totalorder %s956_s10, %s952_s9  ;;  %p1271_p1 = scmp.eq.s32.totalorder %s1009_s13, 0 }
   0x8   : > { %p90_p3 = scmp.eq.s32.totalorder %s581_s14, 1  ;;  %p582_p5 = scmp.ge.s32.totalorder %s964_s12, 1 }
   0x9   : > { %p1018_p4 = por %p1271_p1, %p39_p0  ;;  %p97_p7 = scmp.lt.s32.totalorder %s964_s12, 3 }
   0xa   : > { %p1023_p6 = por %p90_p3, %p39_p0  ;;  %s966_s18 = smov [#allocation5]  }
   0xb   : > { %s1274_s15 = scalar_select %p1018_p4, 1, 0 }
   0xc   : > { %s1275_s16 = scalar_select %p1023_p6, 1, 0 }
   0xd   : > { %p1028_p8 = pnand %p582_p5, %p97_p7  ;;  %s109_s19 = sshll.u32 %s966_s18, 4  ;;  %s1032_s19 = int_to_ptr.vmem [resolvable:$true] %s109_s19 }
   0xe   : > { %s1044_s21 = sadd.s32 1, %s964_s12   ;;  %s26_s22 = sadd.s32 1, %s960_s11 }
   0xf   : > { %s1276_s17 = scalar_select %p1028_p8, 1, 0 }
  0x10   : > { %p783_p9 = pneg %p1028_p8  ;;  %s23_s23 = ssub.s32 %s964_s12, %s1044_s21 }
  0x11   : > { %s836_s26 = scalar_lea.hbm %s1269_s1, 2048 }
  0x12   : > { %p1039_p11 = pnand %p783_p9, %p1271_p1  ;;  %p837_p12 = scmp.ne.s32.totalorder %s1269_s1, %s836_s26 }
  0x13   : > { %p843_p5 = scmp.lt.u32.totalorder %s836_s26, %s1269_s1 }
  0x14   : > { %p838_p13 = pneg %p1039_p11 }
  0x16   : > { %p839_p0 = pnand %p838_p13, %p837_p12 }
  0x18   : > { %p840_p3 = pneg %p839_p0 }
  0x1a   : > { %p845_p7 = pnand %p843_p5, %p840_p3 }
  0x1c   : > { %848 = shalt.err (!%p845_p7)
}
  0x1d   : > { %s849_s3 = scalar_lea.vmem %s1032_s19, 2048  ;;  %p857_p2 = scmp.lt.s32.totalorder %s1032_s19, %s1032_s19 }
  0x1e   : > { %p850_p9 = scmp.ne.s32.totalorder %s1032_s19, %s849_s3  ;;  %p858_p6 = scmp.lt.s32.totalorder %s849_s3, %s849_s3 }
  0x20   : > { %p852_p10 = pnand %p850_p9, %p838_p13  ;;  %p859_p4 = por %p858_p6, %p857_p2 }
  0x22   : > { %p853_p1 = pneg %p852_p10 }
  0x24   : > { %p860_p8 = pnand %p859_p4, %p853_p1 }
  0x26   : > { %863 = shalt.err (!%p860_p8)
}
  0x27   : > { %s967_s4 = smov 128   ;;  %s968_s5 = smov 8  }
  0x28   : > { %786 = dma.hbm_to_vmem [thread:$0]  (!%p1039_p11), %s1269_s1, 2048, %s1032_s19, [#allocation6], %s967_s4, %s967_s4, %s968_s5  }
  0x29   : > { %p24_p1 = scmp.eq.s32.totalorder %s23_s23, 0  ;;  %p33_p2 = scmp.ne.s32.totalorder %s960_s11, %s956_s10 }
  0x2a   : > { %p34_p4 = scmp.eq.s32.totalorder %s964_s12, 0  ;;  %p796_p6 = scmp.lt.s32.totalorder %s964_s12, 2 }
  0x2b   : > { %s1078_s8 = scalar_select %p24_p1, %s960_s11, %s26_s22  }
  0x2c   : > { %p35_p8 = por %p34_p4, %p33_p2  ;;  %p1278_p10 = scmp.eq.s32.totalorder %s1009_s13, 1 }
  0x2d   : > { %s123_s18 = sand.u32 1, %s960_s11   ;;  %s597_s20 = sshll.u32 %s964_s12, 12 }
  0x2e   : > { %p1082_p12 = por %p1278_p10, %p33_p2  ;;  %s585_s24 = sshll.u32 %s123_s18, 8 }
  0x2f   : > { %s1091_s27 = scalar_lea.hbm %s1268_s0, %s597_s20  ;;  %s127_s19 = scalar_lea.vmem [#allocation2], %s585_s24 }
  0x30   : > { %s134_s22 = sshll.u32 %s127_s19, 4  ;;  %p1093_p11 = pnand %p796_p6, %p35_p8  ;;  %s1097_s22 = int_to_ptr.vmem [resolvable:$true] %s134_s22 }
  0x31   : > { %s1099_s28 = scalar_lea.sflag [#allocation3], %s123_s18  ;;  %s864_s29 = scalar_lea.hbm %s1091_s27, 4096 }
  0x32   : > { %p865_p13 = scmp.ne.s32.totalorder %s1091_s27, %s864_s29  ;;  %p866_p0 = pneg %p1093_p11 }
  0x33   : > { %s869_s6 = scalar_lea.hbm %s1268_s0, 8192  ;;  %p870_p7 = scmp.lt.u32.totalorder %s1091_s27, %s1268_s0 }
  0x34   : > { %p867_p3 = pnand %p866_p0, %p865_p13  ;;  %p871_p9 = scmp.lt.u32.totalorder %s869_s6, %s864_s29 }
  0x35   : > { %p873_p2 = scmp.lt.u32.totalorder %s864_s29, %s1091_s27 }
  0x36   : > { %p868_p5 = pneg %p867_p3  ;;  %p872_p1 = por %p871_p9, %p870_p7 }
  0x38   : > { %p874_p4 = por %p873_p2, %p872_p1 }
  0x3a   : > { %p875_p6 = pnand %p874_p4, %p868_p5 }
  0x3c   : > { %878 = shalt.err (!%p875_p6)
}
  0x3d   : > { %s879_s18 = scalar_lea.vmem %s1097_s22, 4096  ;;  %s969_s24 = smov [#allocation2]  }
  0x3e   : > { %p880_p8 = scmp.ne.s32.totalorder %s1097_s22, %s879_s18  ;;  %s884_s25 = sshll.u32 %s969_s24, 4  ;;  %s885_s25 = int_to_ptr.vmem [resolvable:$false] %s884_s25 }
  0x3f   : > { %s886_s26 = scalar_lea.vmem %s885_s25, 8192  ;;  %p887_p3 = scmp.lt.s32.totalorder %s1097_s22, %s885_s25 }
  0x40   : > { %p882_p10 = pnand %p880_p8, %p866_p0  ;;  %p888_p7 = scmp.lt.s32.totalorder %s886_s26, %s879_s18 }
  0x42   : > { %p883_p13 = pneg %p882_p10  ;;  %p889_p9 = por %p888_p7, %p887_p3 }
  0x44   : > { %p890_p1 = pnand %p889_p9, %p883_p13 }
  0x46   : > { %893 = shalt.err (!%p890_p1)
}
  0x47   : > { %790 = dma.hbm_to_vmem [thread:$0]  (!%p1093_p11), %s1091_s27, 4096, %s1097_s22, %s1099_s28, %s967_s4, %s967_s4, %s968_s5  }
  0x48   : > { %p1281_p0 = scmp.ne.s32.totalorder %s1276_s17, 0 }
  0x49   : > { %s1133_s19 = sand.u32 (!%p1281_p0), 1, %s956_s10   ;;  %p1282_p5 = scmp.ne.s32.totalorder (!%p1281_p0), %s1274_s15, 0 }
  0x4a   : > { %146 = sbr.rel (%p1281_p0) target bundleno = 376 (0x178), region = 28  ;;  %s589_s29 = sshll.u32 (!%p1281_p0), %s1133_s19, 8 }
  0x4b   : > { %s149_s30 = scalar_lea.sflag (!%p1281_p0), [#allocation3], %s1133_s19  ;;  %s1139_s23 = scalar_lea.vmem (!%p1281_p0), [#allocation2], %s589_s29 }
  0x51   : > { %939 = dma.done.wait (%p1282_p5), %s149_s30, 4096  }
  0x52   : > { %941 = vsyncadd (%p1282_p5), %s149_s30, 4294963200  ;;  %p1283_p11 = scmp.eq.s32.totalorder %s1009_s13, 0 }
  0x54   : > { %943 = dma.done.wait (%p1283_p11), [#allocation6], 2048   ;;  %p1284_p2 = pmov %p1283_p11 }
  0x55   : > { %v211_v0 = vld [vmem:[#allocation5] sm:$0xff]  ;;  %v212_v1 = vld [vmem:[#allocation5 + $0x8] sm:$0xff]  ;;  %v213_v2 = vld [vmem:[#allocation5 + $0x10] sm:$0xff]  ;;  %s1183_s15 = scalar_lea.vmem [#allocation7], %s589_s29  ;;  %s598_s17 = sshll.u32 %s1009_s13, 12 }
  0x56   : > { %945 = vsyncadd (%p1284_p2), [#allocation6], 4294965248  ;;  %v727_v3 = vpack.c.bf16 %v212_v1, %v211_v0  ;;  %v214_v4 = vld [vmem:[#allocation5 + $0x18] sm:$0xff]  ;;  %v215_v6 = vld [vmem:[#allocation5 + $0x20] sm:$0xff]  ;;  %s498_s4 = sshll.u32 %s1183_s15, 4  ;;  %s1218_s22 = scalar_lea.hbm %s1270_s2, %s598_s17  ;;  %s1220_s4 = int_to_ptr.vmem [resolvable:$true] %s498_s4 }
  0x57   : > { %v731_v5 = vpack.c.bf16 %v214_v4, %v213_v2  ;;  %v216_v7 = vld [vmem:[#allocation5 + $0x28] sm:$0xff]  ;;  %v179_v9 = vld [vmem:[%s1139_s23] sm:$0xff]  ;;  %v217_v11 = vld [vmem:[#allocation5 + $0x30] sm:$0xff]  ;;  %s485_s13 = scalar_lea.sflag [#allocation4], %s1133_s19  ;;  %s894_s28 = scalar_lea.vmem %s1220_s4, 4096 }
  0x58   : > { %728 = vmatprep.subr.bf16.mxu0 %v727_v3  ;;  %759 = vmatprep.subr.bf16.mxu1 %v727_v3  ;;  %v735_v8 = vpack.c.bf16 %v216_v7, %v215_v6  ;;  %v195_v10 = vld [vmem:[%s1139_s23 + $0x80] sm:$0xff]  ;;  %v218_v12 = vld [vmem:[#allocation5 + $0x38] sm:$0xff]  ;;  %v220_v15 = vld [vmem:[#allocation5 + $0x48] sm:$0xff]  ;;  %p895_p4 = scmp.ne.s32.totalorder %s1220_s4, %s894_s28  ;;  %s970_s3 = smov [#allocation7]  }
  0x59   : > { %730 = vmatpush3.bf16.msra.mxu0 %v727_v3  ;;  %767 = vmatpush3.bf16.msra.mxu1 %v727_v3  ;;  %v739_v13 = vpack.c.bf16 %v218_v12, %v217_v11  ;;  %v219_v14 = vld [vmem:[#allocation5 + $0x40] sm:$0xff]  ;;  %v221_v17 = vld [vmem:[#allocation5 + $0x50] sm:$0xff]  ;;  %v222_v18 = vld [vmem:[#allocation5 + $0x58] sm:$0xff]  ;;  %s898_s6 = sshll.u32 %s970_s3, 4  ;;  %s899_s6 = int_to_ptr.vmem [resolvable:$false] %s898_s6 }
  0x5a   : > { %732 = vmatprep.subr.bf16.mxu0 %v731_v5  ;;  %760 = vmatprep.subr.bf16.mxu1 %v731_v5  ;;  %v743_v16 = vpack.c.bf16 %v220_v15, %v219_v14  ;;  %v747_v19 = vpack.c.bf16 %v222_v18, %v221_v17  ;;  %v223_v20 = vld [vmem:[#allocation5 + $0x60] sm:$0xff]  ;;  %v224_v21 = vld [vmem:[#allocation5 + $0x68] sm:$0xff]  ;;  %v225_v23 = vld [vmem:[#allocation5 + $0x70] sm:$0xff]  ;;  %p896_p6 = pnand %p895_p4, %p1082_p12  ;;  %s900_s7 = scalar_lea.vmem %s899_s6, 8192 }
  0x5b   : > { %679 = vmatprep.mubr.f32.mxu0 %v179_v9  ;;  %703 = vmatprep.mubr.f32.mxu1 %v195_v10  ;;  %v751_v22 = vpack.c.bf16 %v224_v21, %v223_v20  ;;  %v226_v24 = vld [vmem:[#allocation5 + $0x78] sm:$0xff]  ;;  %v180_v26 = vld [vmem:[%s1139_s23 + $0x8] sm:$0xff]  ;;  %v181_v28 = vld [vmem:[%s1139_s23 + $0x10] sm:$0xff]  ;;  %p901_p10 = scmp.lt.s32.totalorder %s1220_s4, %s899_s6  ;;  %p902_p13 = scmp.lt.s32.totalorder %s900_s7, %s894_s28 }
  0x5c   : > { %v755_v25 = vpack.c.bf16 %v226_v24, %v225_v23  ;;  %v196_v27 = vld [vmem:[%s1139_s23 + $0x88] sm:$0xff]  ;;  %v197_v29 = vld [vmem:[%s1139_s23 + $0x90] sm:$0xff]  ;;  %v182_v30 = vld [vmem:[%s1139_s23 + $0x18] sm:$0xff]  ;;  %p897_p8 = pneg %p896_p6 }
  0x5d   : > { %734 = vmatpush3.bf16.msra.mxu0 %v731_v5  ;;  %768 = vmatpush3.bf16.msra.mxu1 %v731_v5  ;;  %v198_v31 = vld [vmem:[%s1139_s23 + $0x98] sm:$0xff]  ;;  %v183_v32 = vld [vmem:[%s1139_s23 + $0x20] sm:$0xff]  ;;  %v184_v34 = vld [vmem:[%s1139_s23 + $0x28] sm:$0xff]  ;;  %p903_p3 = por %p902_p13, %p901_p10 }
  0x5e   : > { %736 = vmatprep.subr.bf16.mxu0 %v735_v8  ;;  %761 = vmatprep.subr.bf16.mxu1 %v735_v8  ;;  %v199_v33 = vld [vmem:[%s1139_s23 + $0xa0] sm:$0xff]  ;;  %v200_v35 = vld [vmem:[%s1139_s23 + $0xa8] sm:$0xff]  ;;  %v185_v36 = vld [vmem:[%s1139_s23 + $0x30] sm:$0xff] }
  0x5f   : > { %v201_v37 = vld [vmem:[%s1139_s23 + $0xb0] sm:$0xff]  ;;  %v186_v38 = vld [vmem:[%s1139_s23 + $0x38] sm:$0xff]  ;;  %v187_v40 = vld [vmem:[%s1139_s23 + $0x40] sm:$0xff]  ;;  %p904_p7 = pnand %p903_p3, %p897_p8 }
  0x60   : > { %v202_v39 = vld [vmem:[%s1139_s23 + $0xb8] sm:$0xff]  ;;  %v203_v41 = vld [vmem:[%s1139_s23 + $0xc0] sm:$0xff]  ;;  %v188_v42 = vld [vmem:[%s1139_s23 + $0x48] sm:$0xff] }
  0x61   : > { %738 = vmatpush3.bf16.msra.mxu0 %v735_v8  ;;  %769 = vmatpush3.bf16.msra.mxu1 %v735_v8  ;;  %v204_v43 = vld [vmem:[%s1139_s23 + $0xc8] sm:$0xff]  ;;  %v189_v44 = vld [vmem:[%s1139_s23 + $0x50] sm:$0xff]  ;;  %v190_v46 = vld [vmem:[%s1139_s23 + $0x58] sm:$0xff] }
  0x62   : > { %740 = vmatprep.subr.bf16.mxu0 %v739_v13  ;;  %762 = vmatprep.subr.bf16.mxu1 %v739_v13  ;;  %v205_v45 = vld [vmem:[%s1139_s23 + $0xd0] sm:$0xff]  ;;  %v206_v47 = vld [vmem:[%s1139_s23 + $0xd8] sm:$0xff]  ;;  %v191_v48 = vld [vmem:[%s1139_s23 + $0x60] sm:$0xff] }
  0x63   : > { %v207_v49 = vld [vmem:[%s1139_s23 + $0xe0] sm:$0xff]  ;;  %v192_v50 = vld [vmem:[%s1139_s23 + $0x68] sm:$0xff]  ;;  %v193_v52 = vld [vmem:[%s1139_s23 + $0x70] sm:$0xff] }
  0x64   : > { %v208_v51 = vld [vmem:[%s1139_s23 + $0xe8] sm:$0xff]  ;;  %v209_v53 = vld [vmem:[%s1139_s23 + $0xf0] sm:$0xff]  ;;  %v194_v54 = vld [vmem:[%s1139_s23 + $0x78] sm:$0xff] }
  0x65   : > { %742 = vmatpush3.bf16.msra.mxu0 %v739_v13  ;;  %770 = vmatpush3.bf16.msra.mxu1 %v739_v13  ;;  %v210_v55 = vld [vmem:[%s1139_s23 + $0xf8] sm:$0xff] }
  0x66   : > { %744 = vmatprep.subr.bf16.mxu0 %v743_v16  ;;  %763 = vmatprep.subr.bf16.mxu1 %v743_v16 }
  0x69   : > { %746 = vmatpush3.bf16.msra.mxu0 %v743_v16  ;;  %771 = vmatpush3.bf16.msra.mxu1 %v743_v16 }
  0x6a   : > { %748 = vmatprep.subr.bf16.mxu0 %v747_v19  ;;  %764 = vmatprep.subr.bf16.mxu1 %v747_v19 }
  0x6d   : > { %750 = vmatpush3.bf16.msra.mxu0 %v747_v19  ;;  %772 = vmatpush3.bf16.msra.mxu1 %v747_v19 }
  0x6e   : > { %752 = vmatprep.subr.bf16.mxu0 %v751_v22  ;;  %765 = vmatprep.subr.bf16.mxu1 %v751_v22 }
  0x71   : > { %754 = vmatpush3.bf16.msra.mxu0 %v751_v22  ;;  %773 = vmatpush3.bf16.msra.mxu1 %v751_v22 }
  0x72   : > { %756 = vmatprep.subr.bf16.mxu0 %v755_v25  ;;  %766 = vmatprep.subr.bf16.mxu1 %v755_v25 }
  0x75   : > { %758 = vmatpush3.bf16.msra.mxu0 %v755_v25  ;;  %774 = vmatpush3.bf16.msra.mxu1 %v755_v25 }
  0x78   : > { %680 = vmatmul.mubr.f32.vlgmr.msra.gmra.mrb[0].mxu0 %v180_v26  ;;  %704 = vmatmul.mubr.f32.vlgmr.msra.gmra.mrb[0].mxu1 %v196_v27 }
  0x79   : > { %682 = vmatprep.mubr.f32.mxu0 %v181_v28  ;;  %706 = vmatprep.mubr.f32.mxu1 %v197_v29 }
  0x7c   : > { %683 = vmatmul.mubr.f32.gmra.mrb[2].mxu0 %v182_v30  ;;  %707 = vmatmul.mubr.f32.gmra.mrb[2].mxu1 %v198_v31 }
  0x7d   : > { %685 = vmatprep.mubr.f32.mxu0 %v183_v32  ;;  %709 = vmatprep.mubr.f32.mxu1 %v199_v33 }
  0x80   : > { %686 = vmatmul.mubr.f32.gmra.mrb[4].mxu0 %v184_v34  ;;  %710 = vmatmul.mubr.f32.gmra.mrb[4].mxu1 %v200_v35 }
  0x81   : > { %688 = vmatprep.mubr.f32.mxu0 %v185_v36  ;;  %712 = vmatprep.mubr.f32.mxu1 %v201_v37 }
  0x84   : > { %689 = vmatmul.mubr.f32.gmra.mrb[6].mxu0 %v186_v38  ;;  %713 = vmatmul.mubr.f32.gmra.mrb[6].mxu1 %v202_v39 }
  0x85   : > { %691 = vmatprep.mubr.f32.mxu0 %v187_v40  ;;  %715 = vmatprep.mubr.f32.mxu1 %v203_v41 }
  0x88   : > { %692 = vmatmul.mubr.f32.gmra.mrb[8].mxu0 %v188_v42  ;;  %716 = vmatmul.mubr.f32.gmra.mrb[8].mxu1 %v204_v43 }
  0x89   : > { %694 = vmatprep.mubr.f32.mxu0 %v189_v44  ;;  %718 = vmatprep.mubr.f32.mxu1 %v205_v45 }
  0x8c   : > { %695 = vmatmul.mubr.f32.gmra.mrb[10].mxu0 %v190_v46  ;;  %719 = vmatmul.mubr.f32.gmra.mrb[10].mxu1 %v206_v47 }
  0x8d   : > { %697 = vmatprep.mubr.f32.mxu0 %v191_v48  ;;  %721 = vmatprep.mubr.f32.mxu1 %v207_v49 }
  0x90   : > { %698 = vmatmul.mubr.f32.gmra.mrb[12].mxu0 %v192_v50  ;;  %722 = vmatmul.mubr.f32.gmra.mrb[12].mxu1 %v208_v51 }
  0x91   : > { %700 = vmatprep.mubr.f32.mxu0 %v193_v52  ;;  %724 = vmatprep.mubr.f32.mxu1 %v209_v53 }
  0x94   : > { %701 = vmatmul.mubr.f32.gmra.mrb[14].mxu0 %v194_v54  ;;  %725 = vmatmul.mubr.f32.gmra.mrb[14].mxu1 %v210_v55 }
 0x14b   : > { %v681_v56 = vpop.f32.mrb[0].mxu0  ;;  %v705_v57 = vpop.f32.mrb[0].mxu1 }
 0x14c   : > { %453 = vst [vmem:[%s1183_s15 + $0x8] sm:$0xff] %v681_v56  ;;  %469 = vst [vmem:[%s1183_s15 + $0x88] sm:$0xff] %v705_v57  ;;  %v293_v58 = vpop.f32.mrb[1].mxu0  ;;  %v373_v59 = vpop.f32.mrb[1].mxu1 }
 0x14d   : > { %452 = vst [vmem:[%s1183_s15] sm:$0xff] %v293_v58  ;;  %468 = vst [vmem:[%s1183_s15 + $0x80] sm:$0xff] %v373_v59 }
 0x14f   : > { %v684_v60 = vpop.f32.mrb[2].mxu0  ;;  %v708_v61 = vpop.f32.mrb[2].mxu1 }
 0x150   : > { %455 = vst [vmem:[%s1183_s15 + $0x18] sm:$0xff] %v684_v60  ;;  %471 = vst [vmem:[%s1183_s15 + $0x98] sm:$0xff] %v708_v61  ;;  %v303_v62 = vpop.f32.mrb[3].mxu0  ;;  %v383_v63 = vpop.f32.mrb[3].mxu1 }
 0x151   : > { %454 = vst [vmem:[%s1183_s15 + $0x10] sm:$0xff] %v303_v62  ;;  %470 = vst [vmem:[%s1183_s15 + $0x90] sm:$0xff] %v383_v63 }
 0x153   : > { %v687_v0 = vpop.f32.mrb[4].mxu0  ;;  %v711_v1 = vpop.f32.mrb[4].mxu1 }
 0x154   : > { %457 = vst [vmem:[%s1183_s15 + $0x28] sm:$0xff] %v687_v0  ;;  %473 = vst [vmem:[%s1183_s15 + $0xa8] sm:$0xff] %v711_v1  ;;  %v313_v2 = vpop.f32.mrb[5].mxu0  ;;  %v393_v3 = vpop.f32.mrb[5].mxu1 }
 0x155   : > { %456 = vst [vmem:[%s1183_s15 + $0x20] sm:$0xff] %v313_v2  ;;  %472 = vst [vmem:[%s1183_s15 + $0xa0] sm:$0xff] %v393_v3 }
 0x157   : > { %v690_v4 = vpop.f32.mrb[6].mxu0  ;;  %v714_v5 = vpop.f32.mrb[6].mxu1 }
 0x158   : > { %459 = vst [vmem:[%s1183_s15 + $0x38] sm:$0xff] %v690_v4  ;;  %475 = vst [vmem:[%s1183_s15 + $0xb8] sm:$0xff] %v714_v5  ;;  %v323_v6 = vpop.f32.mrb[7].mxu0  ;;  %v403_v7 = vpop.f32.mrb[7].mxu1 }
 0x159   : > { %458 = vst [vmem:[%s1183_s15 + $0x30] sm:$0xff] %v323_v6  ;;  %474 = vst [vmem:[%s1183_s15 + $0xb0] sm:$0xff] %v403_v7 }
 0x15b   : > { %v693_v8 = vpop.f32.mrb[8].mxu0  ;;  %v717_v9 = vpop.f32.mrb[8].mxu1 }
 0x15c   : > { %461 = vst [vmem:[%s1183_s15 + $0x48] sm:$0xff] %v693_v8  ;;  %477 = vst [vmem:[%s1183_s15 + $0xc8] sm:$0xff] %v717_v9  ;;  %v333_v10 = vpop.f32.mrb[9].mxu0  ;;  %v413_v11 = vpop.f32.mrb[9].mxu1 }
 0x15d   : > { %460 = vst [vmem:[%s1183_s15 + $0x40] sm:$0xff] %v333_v10  ;;  %476 = vst [vmem:[%s1183_s15 + $0xc0] sm:$0xff] %v413_v11 }
 0x15f   : > { %v696_v12 = vpop.f32.mrb[10].mxu0  ;;  %v720_v13 = vpop.f32.mrb[10].mxu1 }
 0x160   : > { %463 = vst [vmem:[%s1183_s15 + $0x58] sm:$0xff] %v696_v12  ;;  %479 = vst [vmem:[%s1183_s15 + $0xd8] sm:$0xff] %v720_v13  ;;  %v343_v14 = vpop.f32.mrb[11].mxu0  ;;  %v423_v15 = vpop.f32.mrb[11].mxu1 }
 0x161   : > { %462 = vst [vmem:[%s1183_s15 + $0x50] sm:$0xff] %v343_v14  ;;  %478 = vst [vmem:[%s1183_s15 + $0xd0] sm:$0xff] %v423_v15 }
 0x163   : > { %v699_v16 = vpop.f32.mrb[12].mxu0  ;;  %v723_v17 = vpop.f32.mrb[12].mxu1 }
 0x164   : > { %465 = vst [vmem:[%s1183_s15 + $0x68] sm:$0xff] %v699_v16  ;;  %481 = vst [vmem:[%s1183_s15 + $0xe8] sm:$0xff] %v723_v17  ;;  %v353_v18 = vpop.f32.mrb[13].mxu0  ;;  %v433_v19 = vpop.f32.mrb[13].mxu1 }
 0x165   : > { %464 = vst [vmem:[%s1183_s15 + $0x60] sm:$0xff] %v353_v18  ;;  %480 = vst [vmem:[%s1183_s15 + $0xe0] sm:$0xff] %v433_v19 }
 0x167   : > { %v702_v20 = vpop.f32.mrb[14].mxu0  ;;  %v726_v21 = vpop.f32.mrb[14].mxu1 }
 0x168   : > { %467 = vst [vmem:[%s1183_s15 + $0x78] sm:$0xff] %v702_v20  ;;  %483 = vst [vmem:[%s1183_s15 + $0xf8] sm:$0xff] %v726_v21  ;;  %v363_v22 = vpop.f32.mrb[15].mxu0  ;;  %v443_v23 = vpop.f32.mrb[15].mxu1 }
 0x169   : > { %466 = vst [vmem:[%s1183_s15 + $0x70] sm:$0xff] %v363_v22  ;;  %482 = vst [vmem:[%s1183_s15 + $0xf0] sm:$0xff] %v443_v23 }
 0x16a   : > { %907 = shalt.err (!%p904_p7)
}
 0x16b   : > { %s908_s20 = scalar_lea.hbm %s1218_s22, 4096  ;;  %s912_s25 = scalar_lea.hbm %s1270_s2, 8192 }
 0x16c   : > { %p909_p9 = scmp.ne.s32.totalorder %s1218_s22, %s908_s20  ;;  %p913_p5 = scmp.lt.u32.totalorder %s1218_s22, %s1270_s2 }
 0x16d   : > { %p914_p11 = scmp.lt.u32.totalorder %s912_s25, %s908_s20  ;;  %p916_p4 = scmp.lt.u32.totalorder %s908_s20, %s1218_s22 }
 0x16e   : > { %p910_p1 = pnand %p909_p9, %p1082_p12 }
 0x16f   : > { %p915_p2 = por %p914_p11, %p913_p5 }
 0x170   : > { %p911_p0 = pneg %p910_p1 }
 0x171   : > { %p917_p6 = por %p916_p4, %p915_p2 }
 0x173   : > { %p918_p8 = pnand %p917_p6, %p911_p0 }
 0x175   : > { %921 = shalt.err (!%p918_p8)
}
 0x176   : > { %s971_s30 = smov 128   ;;  %s972_s23 = smov 8  }
 0x177   : > { %781 = dma.vmem_to_hbm [thread:$0]  (%p1082_p12), %s1220_s4, 4096, %s1218_s22, %s485_s13, %s971_s30, %s971_s30, %s972_s23  }
 0x178 PF: > { %s513_s15 = sand.u32 1, %s952_s9   ;;  %p1285_p10 = scmp.ne.s32.totalorder %s1275_s16, 0 }
 0x179   : > { %p1286_p13 = scmp.ge.s32.totalorder %s964_s12, 2  ;;  %s514_s17 = scalar_lea.sflag [#allocation4], %s513_s15 }
 0x17b   : > { %p792_p3 = pnand %p1286_p13, %p1285_p10 }
 0x17d   : > { %947 = dma.done.wait (!%p792_p3), %s514_s17, 4096  }
 0x17e   : > { %949 = vsyncadd (!%p792_p3), %s514_s17, 4294963200  ;;  %p16_p7 = scmp.ge.s32.totalorder %s1044_s21, 4   ;;  %s1287_s9 = smov %s956_s10 }
 0x17f   : > { %s1288_s10 = smov %s960_s11  ;;  %s1289_s11 = smov %s1078_s8 }
 0x180   : > { %s1290_s12 = smov %s1044_s21  ;;  %18 = sbr.rel (!%p16_p7) target bundleno = 6 (0x6), region = 77 }
 0x187   :  { %519 = vsyncpa [#allocation3], 1 }
 0x188   :  { %521 = vsyncpa [#allocation3 + $0x1], 1 }
 0x189   :  { %522 = vsyncpa [#allocation6], 1 }
 0x18a   :  { %523 = vsyncpa [#allocation4], 1 }
 0x18b   :  { %525 = vsyncpa [#allocation4 + $0x1], 1 }

</bundles_post_ra>
